<compile_context>
chip_gen: v7x
topology: tpu7x:2x2x1
jax: 0.10.0
libtpu: 0.0.40
codegen_flags: <defaults>
</compile_context>

<pallas_src>
import functools
import math

import jax
import jax.numpy as jnp
from jax.experimental import pallas as pl
from jax.experimental.pallas import tpu as pltpu

_EPS = 1e-5


def _ln_folded_kernel(x_ref, w_ref, b_ref, s_ref, o_ref, *, inv_c):
    # x_ref: (TM, L) with L = r*C (r original rows packed per 128-lane row).
    # w_ref, b_ref: (1, L)   weight/bias tiled r times along the lane axis.
    # s_ref: (L, L) block-diagonal ones; x @ s == per-segment sum broadcast in-segment.
    x = x_ref[...].astype(jnp.float32)
    s = s_ref[...]
    s1 = jnp.dot(x, s, preferred_element_type=jnp.float32)        # segmented sum(x)
    s2 = jnp.dot(x * x, s, preferred_element_type=jnp.float32)    # segmented sum(x^2)
    mean = s1 * inv_c
    var = s2 * inv_c - mean * mean
    inv = jax.lax.rsqrt(var + _EPS)
    w = w_ref[...].astype(jnp.float32)
    b = b_ref[...].astype(jnp.float32)
    o_ref[...] = ((x - mean) * inv * w + b).astype(o_ref.dtype)


def _ln_plain_kernel(x_ref, w_ref, b_ref, o_ref, *, inv_c):
    # x_ref: (TM, C) -- block covers the full normalization axis.
    x = x_ref[...].astype(jnp.float32)
    s1 = jnp.sum(x, axis=-1, keepdims=True)
    s2 = jnp.sum(x * x, axis=-1, keepdims=True)
    mean = s1 * inv_c
    var = s2 * inv_c - mean * mean
    inv = jax.lax.rsqrt(var + _EPS)
    w = w_ref[...].astype(jnp.float32)
    b = b_ref[...].astype(jnp.float32)
    o_ref[...] = ((x - mean) * inv * w + b).astype(o_ref.dtype)


def _pick_row_block(n_rows, row_bytes, target_block_bytes):
    """Multiple-of-8 row tile, ~target bytes per block, >=2 grid steps when possible."""
    tm = max(8, (target_block_bytes // max(row_bytes, 1)) // 8 * 8)
    if n_rows > 8:
        # Keep at least 2 programs so v7x megacore can shard the row axis.
        half = max(8, (((n_rows + 1) // 2) + 7) // 8 * 8)
        tm = min(tm, half)
    tm = min(tm, max(8, ((n_rows + 7) // 8) * 8))   # no bigger than the (padded) array
    return tm


def withbias_layernorm(x, weight, bias, *, target_block_bytes=2 * 1024 * 1024):
    """x: (..., C), weight/bias: (C,). Returns same shape/dtype as x."""
    orig_shape = x.shape
    C = orig_shape[-1]
    M = int(math.prod(orig_shape[:-1]))  # math.prod(()) == 1 for 1-D x
    x2 = x.reshape(M, C)

    # Lane-dense packing: fold r = 128 // C rows into one 128-lane row when possible.
    r = 1
    if C < 128 and 128 % C == 0 and M % (128 // C) == 0:
        r = 128 // C
    L = r * C
    Mf = M // r

    xf = x2.reshape(Mf, L)
    wf = jnp.tile(weight.reshape(-1), r).reshape(1, L)   # wf[j] = weight[j % C]
    bf = jnp.tile(bias.reshape(-1), r).reshape(1, L)

    itemsize = jnp.dtype(x.dtype).itemsize
    tm = _pick_row_block(Mf, L * itemsize, target_block_bytes)
    grid = (pl.cdiv(Mf, tm),)

    compiler_params = pltpu.CompilerParams(
        dimension_semantics=("parallel",),
        vmem_limit_bytes=32 * 1024 * 1024,   # v5e default is 16 MiB; 32 MiB is safe on all chips
    )
    out_shape = jax.ShapeDtypeStruct((Mf, L), x.dtype)
    x_spec = pl.BlockSpec((tm, L), lambda i: (i, 0))
    vec_spec = pl.BlockSpec((1, L), lambda i: (0, 0))    # fetched once, stays resident
    out_spec = pl.BlockSpec((tm, L), lambda i: (i, 0))

    if r > 1:
        lane_seg = jnp.arange(L, dtype=jnp.int32) // C
        seg = (lane_seg[:, None] == lane_seg[None, :]).astype(jnp.float32)  # (L, L)
        kernel = functools.partial(_ln_folded_kernel, inv_c=1.0 / C)
        out2 = pl.pallas_call(
            kernel,
            out_shape=out_shape,
            grid_spec=pltpu.PrefetchScalarGridSpec(
                num_scalar_prefetch=0,
                grid=grid,
                in_specs=[
                    x_spec,
                    vec_spec,
                    vec_spec,
                    pl.BlockSpec((L, L), lambda i: (0, 0)),
                ],
                out_specs=out_spec,
            ),
            compiler_params=compiler_params,
        )(xf, wf, bf, seg)
    else:
        kernel = functools.partial(_ln_plain_kernel, inv_c=1.0 / C)
        out2 = pl.pallas_call(
            kernel,
            out_shape=out_shape,
            grid_spec=pltpu.PrefetchScalarGridSpec(
                num_scalar_prefetch=0,
                grid=grid,
                in_specs=[x_spec, vec_spec, vec_spec],
                out_specs=out_spec,
            ),
            compiler_params=compiler_params,
        )(xf, wf, bf)

    return out2.reshape(orig_shape)


def _reference(x, weight, bias):
    x32 = x.astype(jnp.float32)
    mu = jnp.mean(x32, axis=-1, keepdims=True)
    var = jnp.var(x32, axis=-1, keepdims=True)   # ddof=0 == unbiased=False
    y = (x32 - mu) / jnp.sqrt(var + _EPS) * weight.astype(jnp.float32) \
        + bias.astype(jnp.float32)
    return y.astype(x.dtype)


if __name__ == "__main__":
    key = jax.random.PRNGKey(0)
    kx, kw, kb, kx2 = jax.random.split(key, 4)

    # Case 1: (batch, tokens, channels), C=32 -> lane-dense folded path
    # (4 rows packed per 128-lane row). Module-default parameters.
    B, N, C = 2, 64, 32
    x = jax.random.normal(kx, (B, N, C), dtype=jnp.float32)
    weight = jnp.ones((C,), dtype=jnp.float32)     # nn.Parameter(torch.ones)
    bias = jnp.zeros((C,), dtype=jnp.float32)      # nn.Parameter(torch.zeros)
    out = jax.block_until_ready(withbias_layernorm(x, weight, bias))
    assert out.shape == x.shape and out.dtype == x.dtype
    assert jnp.allclose(out, _reference(x, weight, bias), atol=2e-5, rtol=2e-5), \
        "folded path (default params) mismatch"

    # Case 2: same folded path with non-trivial weight/bias (checks lane tiling of params).
    w_nt = 1.0 + 0.1 * jax.random.normal(kw, (C,), dtype=jnp.float32)
    b_nt = jnp.linspace(-0.5, 0.5, C, dtype=jnp.float32)
    out_nt = jax.block_until_ready(withbias_layernorm(x, w_nt, b_nt))
    assert jnp.allclose(out_nt, _reference(x, w_nt, b_nt), atol=2e-5, rtol=2e-5), \
        "folded path (non-trivial params) mismatch"

    # Case 3: C not foldable (plain path) + ragged final row block.
    C2 = 160
    x2 = jax.random.normal(kx2, (3, 7, C2), dtype=jnp.float32)
    w2 = 1.0 + 0.1 * jax.random.normal(kb, (C2,), dtype=jnp.float32)
    b2 = jnp.linspace(-1.0, 1.0, C2, dtype=jnp.float32)
    out2 = jax.block_until_ready(withbias_layernorm(x2, w2, b2))
    assert jnp.allclose(out2, _reference(x2, w2, b2), atol=2e-5, rtol=2e-5), \
        "plain path mismatch"

    print("KERNEL_OK")
</pallas_src>

<mosaic_0001>
module attributes {stable_mosaic.version = 11 : i64} {
  func.func @_ln_folded_kernel(%arg0: i32, %arg1: memref<16x128xf32, #tpu.memory_space<vmem>>, %arg2: memref<1x128xf32, #tpu.memory_space<vmem>>, %arg3: memref<1x128xf32, #tpu.memory_space<vmem>>, %arg4: memref<128x128xf32, #tpu.memory_space<vmem>>, %arg5: memref<16x128xf32, #tpu.memory_space<vmem>>) attributes {dimension_semantics = [#tpu.dimension_semantics<parallel>], iteration_bounds = array<i64: 2>, scalar_prefetch = 0 : i64, scratch_operands = 0 : i64, tpu.core_type = #tpu.core_type<tc>, window_params = [{transform_indices = @transform_0, window_bounds = array<i64: 16, 128>}, {pipeline_mode = #tpu.pipeline_mode<synchronous>, transform_indices = @transform_1, window_bounds = array<i64: 1, 128>}, {pipeline_mode = #tpu.pipeline_mode<synchronous>, transform_indices = @transform_2, window_bounds = array<i64: 1, 128>}, {pipeline_mode = #tpu.pipeline_mode<synchronous>, transform_indices = @transform_3, window_bounds = array<i64: 128, 128>}, {transform_indices = @transform_4, window_bounds = array<i64: 16, 128>}]} {
    %c0 = arith.constant 0 : index
    %c0_0 = arith.constant 0 : index
    %0 = vector.load %arg1[%c0, %c0_0] : memref<16x128xf32, #tpu.memory_space<vmem>>, vector<16x128xf32>
    %c0_1 = arith.constant 0 : index
    %c0_2 = arith.constant 0 : index
    %1 = vector.load %arg4[%c0_1, %c0_2] : memref<128x128xf32, #tpu.memory_space<vmem>>, vector<128x128xf32>
    %cst = arith.constant dense<0.000000e+00> : vector<16x128xf32>
    %2 = tpu.matmul %0, %1, %cst {dimension_numbers = #tpu.dot_dimension_numbers<[1], [0], [0], [1], [0, 0, 1, 1], [], []>} : vector<16x128xf32>, vector<128x128xf32>, vector<16x128xf32> -> vector<16x128xf32>
    %3 = arith.mulf %0, %0 : vector<16x128xf32>
    %cst_3 = arith.constant dense<0.000000e+00> : vector<16x128xf32>
    %4 = tpu.matmul %3, %1, %cst_3 {dimension_numbers = #tpu.dot_dimension_numbers<[1], [0], [0], [1], [0, 0, 1, 1], [], []>} : vector<16x128xf32>, vector<128x128xf32>, vector<16x128xf32> -> vector<16x128xf32>
    %cst_4 = arith.constant 3.125000e-02 : f32
    %5 = vector.broadcast %cst_4 : f32 to vector<16x128xf32>
    %6 = arith.mulf %2, %5 : vector<16x128xf32>
    %cst_5 = arith.constant 3.125000e-02 : f32
    %7 = vector.broadcast %cst_5 : f32 to vector<16x128xf32>
    %8 = arith.mulf %4, %7 : vector<16x128xf32>
    %9 = arith.mulf %6, %6 : vector<16x128xf32>
    %10 = arith.subf %8, %9 : vector<16x128xf32>
    %cst_6 = arith.constant 9.99999974E-6 : f32
    %11 = vector.broadcast %cst_6 : f32 to vector<16x128xf32>
    %12 = arith.addf %10, %11 : vector<16x128xf32>
    %13 = math.rsqrt %12 : vector<16x128xf32>
    %c0_7 = arith.constant 0 : index
    %c0_8 = arith.constant 0 : index
    %14 = vector.load %arg2[%c0_7, %c0_8] : memref<1x128xf32, #tpu.memory_space<vmem>>, vector<1x128xf32>
    %c0_9 = arith.constant 0 : index
    %c0_10 = arith.constant 0 : index
    %15 = vector.load %arg3[%c0_9, %c0_10] : memref<1x128xf32, #tpu.memory_space<vmem>>, vector<1x128xf32>
    %16 = arith.subf %0, %6 : vector<16x128xf32>
    %17 = arith.mulf %16, %13 : vector<16x128xf32>
    %18 = vector.broadcast %14 : vector<1x128xf32> to vector<16x128xf32>
    %19 = arith.mulf %17, %18 : vector<16x128xf32>
    %20 = vector.broadcast %15 : vector<1x128xf32> to vector<16x128xf32>
    %21 = arith.addf %19, %20 : vector<16x128xf32>
    %c0_11 = arith.constant 0 : index
    %c0_12 = arith.constant 0 : index
    %22 = vector.load %arg5[%c0_11, %c0_12] : memref<16x128xf32, #tpu.memory_space<vmem>>, vector<16x128xf32>
    tpu.vector_store %arg5[%c0_11, %c0_12], %21 {strides = array<i32>} : memref<16x128xf32, #tpu.memory_space<vmem>>, vector<16x128xf32>,
    return
  }
  func.func @transform_0(%arg0: i32) -> (i32, i32) {
    %c0_i32 = arith.constant 0 : i32
    %c0_i32_0 = arith.constant 0 : i32
    return %arg0, %c0_i32 : i32, i32
  }
  func.func @transform_1(%arg0: i32) -> (i32, i32) {
    %c0_i32 = arith.constant 0 : i32
    %c0_i32_0 = arith.constant 0 : i32
    %c0_i32_1 = arith.constant 0 : i32
    return %c0_i32, %c0_i32_0 : i32, i32
  }
  func.func @transform_2(%arg0: i32) -> (i32, i32) {
    %c0_i32 = arith.constant 0 : i32
    %c0_i32_0 = arith.constant 0 : i32
    %c0_i32_1 = arith.constant 0 : i32
    return %c0_i32, %c0_i32_0 : i32, i32
  }
  func.func @transform_3(%arg0: i32) -> (i32, i32) {
    %c0_i32 = arith.constant 0 : i32
    %c0_i32_0 = arith.constant 0 : i32
    %c0_i32_1 = arith.constant 0 : i32
    return %c0_i32, %c0_i32_0 : i32, i32
  }
  func.func @transform_4(%arg0: i32) -> (i32, i32) {
    %c0_i32 = arith.constant 0 : i32
    %c0_i32_0 = arith.constant 0 : i32
    return %arg0, %c0_i32 : i32, i32
  }
}

</mosaic_0001>

<bundles_post_ra>
// kernel: tpu_custom_call.1
= control target key start
LH: loop header
LB: loop body
LE: loop exit
PB: predicated region body
PF: predicated region fallthrough
CT: control target
= control target key end

     0   :  { %9 = vsyncpa [#allocation3], 0  ;;  %s1180_s0 = inlined_call_operand.hbm [shape: f32[32,128], index: 0, kind: input, shape index: {}]   ;;  %s1181_s1 = inlined_call_operand.vmem [shape: f32[1,128], index: 1, kind: input, shape index: {}]   ;;  %s1182_s2 = inlined_call_operand.vmem [shape: f32[1,128], index: 2, kind: input, shape index: {}]   ;;  %s1183_s3 = inlined_call_operand.hbm [shape: f32[128,128], index: 3, kind: input, shape index: {}]   ;;  %s1184_s4 = inlined_call_operand.hbm [shape: f32[32,128], index: 4, kind: output, shape index: {}]  }
   0x1   :  { %11 = vsyncpa [#allocation3 + $0x1], 0 }
   0x2   :  { %12 = vsyncpa [#allocation6], 0 }
   0x3   :  { %13 = vsyncpa [#allocation4], 0 }
   0x4   :  { %15 = vsyncpa [#allocation4 + $0x1], 0  ;;  %s953_s15 = smov 0   ;;  %s955_s16 = smov 0  }
   0x5   :  { %s957_s17 = smov 0   ;;  %s959_s18 = smov 0  }
   0x6 LB: > { %s974_s19 = sadd.s32 4294967295, %s919_s18   ;;  %s536_s20 = sadd.s32 4294967294, %s919_s18   ;;  %s919_s18 = sphi %s959_s18, %s1204_s18   ;;  %s915_s17 = sphi %s957_s17, %s1203_s17   ;;  %s911_s16 = sphi %s955_s16, %s1202_s16   ;;  %s907_s15 = sphi %s953_s15, %s1201_s15  }
   0x7   : > { %p41_p0 = scmp.ne.s32.totalorder %s911_s16, %s907_s15  ;;  %p1185_p1 = scmp.eq.s32.totalorder %s974_s19, 0 }
   0x8   : > { %p134_p3 = scmp.eq.s32.totalorder %s536_s20, 1  ;;  %p537_p5 = scmp.ge.s32.totalorder %s919_s18, 1 }
   0x9   : > { %p983_p4 = por %p1185_p1, %p41_p0  ;;  %p141_p7 = scmp.lt.s32.totalorder %s919_s18, 3 }
   0xa   : > { %p988_p6 = por %p134_p3, %p41_p0  ;;  %s921_s24 = smov [#allocation5]  }
   0xb   : > { %s1188_s21 = scalar_select %p983_p4, 1, 0 }
   0xc   : > { %s1189_s22 = scalar_select %p988_p6, 1, 0 }
   0xd   : > { %p993_p8 = pnand %p537_p5, %p141_p7  ;;  %s159_s25 = sshll.u32 %s921_s24, 4  ;;  %s997_s25 = int_to_ptr.vmem [resolvable:$true] %s159_s25 }
   0xe   : > { %s1009_s27 = sadd.s32 1, %s919_s18   ;;  %s28_s28 = sadd.s32 1, %s915_s17 }
   0xf   : > { %s1190_s23 = scalar_select %p993_p8, 1, 0 }
  0x10   : > { %p734_p9 = pneg %p993_p8  ;;  %s25_s29 = ssub.s32 %s919_s18, %s1009_s27 }
  0x11   : > { %s791_s6 = scalar_lea.hbm %s1183_s3, 2048 }
  0x12   : > { %p1004_p11 = pnand %p734_p9, %p1185_p1  ;;  %p792_p12 = scmp.ne.s32.totalorder %s1183_s3, %s791_s6 }
  0x13   : > { %p798_p5 = scmp.lt.u32.totalorder %s791_s6, %s1183_s3 }
  0x14   : > { %p793_p13 = pneg %p1004_p11 }
  0x16   : > { %p794_p0 = pnand %p793_p13, %p792_p12 }
  0x18   : > { %p795_p3 = pneg %p794_p0 }
  0x1a   : > { %p800_p7 = pnand %p798_p5, %p795_p3 }
  0x1c   : > { %803 = shalt.err (!%p800_p7)
}
  0x1d   : > { %s804_s11 = scalar_lea.vmem %s997_s25, 2048  ;;  %p812_p2 = scmp.lt.s32.totalorder %s997_s25, %s997_s25 }
  0x1e   : > { %p805_p9 = scmp.ne.s32.totalorder %s997_s25, %s804_s11  ;;  %p813_p6 = scmp.lt.s32.totalorder %s804_s11, %s804_s11 }
  0x20   : > { %p807_p10 = pnand %p805_p9, %p793_p13  ;;  %p814_p4 = por %p813_p6, %p812_p2 }
  0x22   : > { %p808_p1 = pneg %p807_p10 }
  0x24   : > { %p815_p8 = pnand %p814_p4, %p808_p1 }
  0x26   : > { %818 = shalt.err (!%p815_p8)
}
  0x27   : > { %s922_s12 = smov 128   ;;  %s923_s13 = smov 8  }
  0x28   : > { %737 = dma.hbm_to_vmem [thread:$0]  (!%p1004_p11), %s1183_s3, 2048, %s997_s25, [#allocation6], %s922_s12, %s922_s12, %s923_s13  }
  0x29   : > { %p26_p1 = scmp.eq.s32.totalorder %s25_s29, 0  ;;  %p35_p2 = scmp.ne.s32.totalorder %s915_s17, %s911_s16 }
  0x2a   : > { %p36_p4 = scmp.eq.s32.totalorder %s919_s18, 0  ;;  %p747_p6 = scmp.lt.s32.totalorder %s919_s18, 2 }
  0x2b   : > { %s1043_s24 = scalar_select %p26_p1, %s915_s17, %s28_s28  }
  0x2c   : > { %p37_p8 = por %p36_p4, %p35_p2  ;;  %p1192_p10 = scmp.eq.s32.totalorder %s974_s19, 1 }
  0x2d   : > { %s173_s26 = sand.u32 1, %s915_s17   ;;  %s554_s5 = sshll.u32 %s919_s18, 8 }
  0x2e   : > { %p1047_p12 = por %p1192_p10, %p35_p2  ;;  %s540_s6 = sshll.u32 %s173_s26, 4 }
  0x2f   : > { %s1056_s9 = scalar_lea.hbm %s1180_s0, %s554_s5  ;;  %s177_s25 = scalar_lea.vmem [#allocation2], %s540_s6 }
  0x30   : > { %s184_s28 = sshll.u32 %s177_s25, 4  ;;  %p1058_p11 = pnand %p747_p6, %p37_p8  ;;  %s1062_s28 = int_to_ptr.vmem [resolvable:$true] %s184_s28 }
  0x31   : > { %s1064_s10 = scalar_lea.sflag [#allocation3], %s173_s26  ;;  %s819_s11 = scalar_lea.hbm %s1056_s9, 256 }
  0x32   : > { %p820_p13 = scmp.ne.s32.totalorder %s1056_s9, %s819_s11  ;;  %p821_p0 = pneg %p1058_p11 }
  0x33   : > { %s824_s5 = scalar_lea.hbm %s1180_s0, 512  ;;  %p825_p7 = scmp.lt.u32.totalorder %s1056_s9, %s1180_s0 }
  0x34   : > { %p822_p3 = pnand %p821_p0, %p820_p13  ;;  %p826_p9 = scmp.lt.u32.totalorder %s824_s5, %s819_s11 }
  0x35   : > { %p828_p2 = scmp.lt.u32.totalorder %s819_s11, %s1056_s9 }
  0x36   : > { %p823_p5 = pneg %p822_p3  ;;  %p827_p1 = por %p826_p9, %p825_p7 }
  0x38   : > { %p829_p4 = por %p828_p2, %p827_p1 }
  0x3a   : > { %p830_p6 = pnand %p829_p4, %p823_p5 }
  0x3c   : > { %833 = shalt.err (!%p830_p6)
}
  0x3d   : > { %s834_s26 = scalar_lea.vmem %s1062_s28, 256  ;;  %s924_s8 = smov [#allocation2]  }
  0x3e   : > { %p835_p8 = scmp.ne.s32.totalorder %s1062_s28, %s834_s26  ;;  %s839_s25 = sshll.u32 %s924_s8, 4  ;;  %s840_s25 = int_to_ptr.vmem [resolvable:$false] %s839_s25 }
  0x3f   : > { %s841_s14 = scalar_lea.vmem %s840_s25, 512  ;;  %p842_p3 = scmp.lt.s32.totalorder %s1062_s28, %s840_s25 }
  0x40   : > { %p837_p10 = pnand %p835_p8, %p821_p0  ;;  %p843_p7 = scmp.lt.s32.totalorder %s841_s14, %s834_s26 }
  0x42   : > { %p838_p13 = pneg %p837_p10  ;;  %p844_p9 = por %p843_p7, %p842_p3 }
  0x44   : > { %p845_p1 = pnand %p844_p9, %p838_p13 }
  0x46   : > { %848 = shalt.err (!%p845_p1)
}
  0x47   : > { %741 = dma.hbm_to_vmem [thread:$0]  (!%p1058_p11), %s1056_s9, 256, %s1062_s28, %s1064_s10, %s922_s12, %s922_s12, %s923_s13  }
  0x48   : > { %p1195_p0 = scmp.ne.s32.totalorder %s1190_s23, 0 }
  0x49   : > { %s1098_s11 = sand.u32 (!%p1195_p0), 1, %s911_s16   ;;  %p1196_p5 = scmp.ne.s32.totalorder (!%p1195_p0), %s1188_s21, 0 }
  0x4a   : > { %196 = sbr.rel (%p1195_p0) target bundleno = 373 (0x175), region = 36  ;;  %s544_s20 = sshll.u32 (!%p1195_p0), %s1098_s11, 4 }
  0x4b   : > { %s199_s5 = scalar_lea.sflag (!%p1195_p0), [#allocation3], %s1098_s11  ;;  %s1104_s29 = scalar_lea.vmem (!%p1195_p0), [#allocation2], %s544_s20 }
  0x51   : > { %894 = dma.done.wait (%p1196_p5), %s199_s5, 256  }
  0x52   : > { %896 = vsyncadd (%p1196_p5), %s199_s5, 4294967040  ;;  %p1197_p11 = scmp.eq.s32.totalorder %s974_s19, 0 }
  0x54   : > { %898 = dma.done.wait (%p1197_p11), [#allocation6], 2048   ;;  %p1198_p2 = pmov %p1197_p11 }
  0x55   : > { %v235_v0 = vld [vmem:[#allocation5] sm:$0xff]  ;;  %v236_v1 = vld [vmem:[#allocation5 + $0x8] sm:$0xff]  ;;  %v237_v2 = vld [vmem:[#allocation5 + $0x10] sm:$0xff]  ;;  %s555_s9 = sshll.u32 %s974_s19, 8  ;;  %s230_s28 = scalar_lea.vmem [#allocation7], %s544_s20 }
  0x56   : > { %900 = vsyncadd (%p1198_p2), [#allocation6], 4294965248  ;;  %v662_v3 = vpack.c.bf16 %v236_v1, %v235_v0  ;;  %v238_v4 = vld [vmem:[#allocation5 + $0x18] sm:$0xff]  ;;  %v239_v6 = vld [vmem:[#allocation5 + $0x20] sm:$0xff]  ;;  %s453_s10 = sshll.u32 %s230_s28, 4  ;;  %s1134_s26 = scalar_lea.hbm %s1184_s4, %s555_s9  ;;  %s1136_s10 = int_to_ptr.vmem [resolvable:$true] %s453_s10 }
  0x57   : > { %v666_v5 = vpack.c.bf16 %v238_v4, %v237_v2  ;;  %v240_v7 = vld [vmem:[#allocation5 + $0x28] sm:$0xff]  ;;  %v1115_v9 = vld [vmem:[%s1104_s29] sm:$0xff]  ;;  %v242_v11 = vld [vmem:[#allocation5 + $0x38] sm:$0xff]  ;;  %s440_s19 = scalar_lea.sflag [#allocation4], %s1098_s11  ;;  %s849_s8 = scalar_lea.vmem %s1136_s10, 256 }
  0x58   : > { %663 = vmatprep.subr.bf16.mxu0 %v662_v3  ;;  %695 = vmatprep.subr.bf16.mxu1 %v662_v3  ;;  %v670_v8 = vpack.c.bf16 %v240_v7, %v239_v6  ;;  %v241_v10 = vld [vmem:[#allocation5 + $0x30] sm:$0xff]  ;;  %v326_v12 = vmul.f32 %v1115_v9, %v1115_v9  ;;  %v243_v14 = vld [vmem:[#allocation5 + $0x40] sm:$0xff]  ;;  %v244_v15 = vld [vmem:[#allocation5 + $0x48] sm:$0xff]  ;;  %p850_p4 = scmp.ne.s32.totalorder %s1136_s10, %s849_s8  ;;  %s925_s25 = smov [#allocation7]  }
  0x59   : > { %665 = vmatpush3.bf16.msra.mxu0 %v662_v3  ;;  %697 = vmatpush3.bf16.msra.mxu1 %v662_v3  ;;  %v674_v13 = vpack.c.bf16 %v242_v11, %v241_v10  ;;  %v678_v16 = vpack.c.bf16 %v244_v15, %v243_v14  ;;  %v245_v17 = vld [vmem:[#allocation5 + $0x50] sm:$0xff]  ;;  %v246_v18 = vld [vmem:[#allocation5 + $0x58] sm:$0xff]  ;;  %v247_v20 = vld [vmem:[#allocation5 + $0x60] sm:$0xff]  ;;  %s853_s14 = sshll.u32 %s925_s25, 4  ;;  %s854_s14 = int_to_ptr.vmem [resolvable:$false] %s853_s14 }
  0x5a   : > { %667 = vmatprep.subr.bf16.mxu0 %v666_v5  ;;  %699 = vmatprep.subr.bf16.mxu1 %v666_v5  ;;  %v682_v19 = vpack.c.bf16 %v246_v18, %v245_v17  ;;  %v248_v21 = vld [vmem:[#allocation5 + $0x68] sm:$0xff]  ;;  %v249_v23 = vld [vmem:[#allocation5 + $0x70] sm:$0xff]  ;;  %v250_v24 = vld [vmem:[#allocation5 + $0x78] sm:$0xff]  ;;  %p851_p6 = pnand %p850_p4, %p1047_p12  ;;  %s855_s20 = scalar_lea.vmem %s854_s14, 512 }
  0x5b   : > { %624 = vmatprep.mubr.f32.mxu0 %v1115_v9  ;;  %659 = vmatprep.mubr.f32.mxu1 %v326_v12  ;;  %v686_v22 = vpack.c.bf16 %v248_v21, %v247_v20  ;;  %v690_v25 = vpack.c.bf16 %v250_v24, %v249_v23  ;;  %v234_v26 = vld [vmem:[%s1104_s29 + $0x8] sm:$0xff]  ;;  %v547_v45 = vld [vmem:[%s1181_s1] ss:$0 sm:$0xff]  ;;  %p856_p10 = scmp.lt.s32.totalorder %s1136_s10, %s854_s14  ;;  %p857_p13 = scmp.lt.s32.totalorder %s855_s20, %s849_s8 }
  0x5c   : > { %v327_v27 = vmul.f32 %v234_v26, %v234_v26  ;;  %v548_v48 = vld [vmem:[%s1182_s2] ss:$0 sm:$0xff]  ;;  %p852_p8 = pneg %p851_p6 }
  0x5d   : > { %669 = vmatpush3.bf16.msra.mxu0 %v666_v5  ;;  %701 = vmatpush3.bf16.msra.mxu1 %v666_v5  ;;  %p858_p3 = por %p857_p13, %p856_p10 }
  0x5e   : > { %671 = vmatprep.subr.bf16.mxu0 %v670_v8  ;;  %703 = vmatprep.subr.bf16.mxu1 %v670_v8 }
  0x5f   : > { %p859_p7 = pnand %p858_p3, %p852_p8 }
  0x61   : > { %673 = vmatpush3.bf16.msra.mxu0 %v670_v8  ;;  %705 = vmatpush3.bf16.msra.mxu1 %v670_v8 }
  0x62   : > { %675 = vmatprep.subr.bf16.mxu0 %v674_v13  ;;  %707 = vmatprep.subr.bf16.mxu1 %v674_v13 }
  0x65   : > { %677 = vmatpush3.bf16.msra.mxu0 %v674_v13  ;;  %709 = vmatpush3.bf16.msra.mxu1 %v674_v13 }
  0x66   : > { %679 = vmatprep.subr.bf16.mxu0 %v678_v16  ;;  %711 = vmatprep.subr.bf16.mxu1 %v678_v16 }
  0x69   : > { %681 = vmatpush3.bf16.msra.mxu0 %v678_v16  ;;  %713 = vmatpush3.bf16.msra.mxu1 %v678_v16 }
  0x6a   : > { %683 = vmatprep.subr.bf16.mxu0 %v682_v19  ;;  %715 = vmatprep.subr.bf16.mxu1 %v682_v19 }
  0x6d   : > { %685 = vmatpush3.bf16.msra.mxu0 %v682_v19  ;;  %717 = vmatpush3.bf16.msra.mxu1 %v682_v19 }
  0x6e   : > { %687 = vmatprep.subr.bf16.mxu0 %v686_v22  ;;  %719 = vmatprep.subr.bf16.mxu1 %v686_v22 }
  0x71   : > { %689 = vmatpush3.bf16.msra.mxu0 %v686_v22  ;;  %721 = vmatpush3.bf16.msra.mxu1 %v686_v22 }
  0x72   : > { %691 = vmatprep.subr.bf16.mxu0 %v690_v25  ;;  %723 = vmatprep.subr.bf16.mxu1 %v690_v25 }
  0x75   : > { %693 = vmatpush3.bf16.msra.mxu0 %v690_v25  ;;  %725 = vmatpush3.bf16.msra.mxu1 %v690_v25 }
  0x78   : > { %625 = vmatmul.mubr.f32.vlgmr.msra.gmra.mrb[0].mxu0 %v234_v26  ;;  %660 = vmatmul.mubr.f32.vlgmr.msra.gmra.mrb[0].mxu1 %v327_v27 }
 0x14b   : > { %v626_v28 = vpop.f32.mrb[0].mxu0  ;;  %v661_v29 = vpop.f32.mrb[0].mxu1 }
 0x14c   : > { %v404_v30 = vmul.f32 0.03125, %v626_v28  ;;  %v317_v31 = vpop.f32.mrb[1].mxu0  ;;  %v406_v32 = vmul.f32 0.03125, %v661_v29  ;;  %v394_v33 = vpop.f32.mrb[1].mxu1 }
 0x14d   : > { %v403_v34 = vmul.f32 0.03125, %v317_v31  ;;  %v405_v35 = vmul.f32 0.03125, %v394_v33 }
 0x14e   : > { %v408_v36 = vmul.f32 %v404_v30, %v404_v30  ;;  %v418_v42 = vsub.f32 %v234_v26, %v404_v30 }
 0x14f   : > { %v407_v37 = vmul.f32 %v403_v34, %v403_v34  ;;  %v417_v44 = vsub.f32 %v1115_v9, %v403_v34 }
 0x150   : > { %v410_v38 = vsub.f32 %v406_v32, %v408_v36 }
 0x151   : > { %v409_v39 = vsub.f32 %v405_v35, %v407_v37 }
 0x152   : > { %v412_v40 = vadd.f32 1e-05, %v410_v38 }
 0x153   : > { %v411_v41 = vadd.f32 1e-05, %v409_v39 }
 0x154   : > { %787 = vrsqrt.f32 %v412_v40 }
 0x155   : > { %789 = vrsqrt.f32 %v411_v41 }
 0x15e   : > { %v788_v43 = vpop.eup %787 }
 0x15f   : > { %v790_v46 = vpop.eup %789  ;;  %v420_v47 = vmul.f32 %v788_v43, %v418_v42 }
 0x160   : > { %v419_v49 = vmul.f32 %v790_v46, %v417_v44 }
 0x161   : > { %v428_v50 = vmul.f32 %v547_v45, %v420_v47 }
 0x162   : > { %v427_v51 = vmul.f32 %v547_v45, %v419_v49 }
 0x163   : > { %v436_v52 = vadd.f32 %v548_v48, %v428_v50 }
 0x164   : > { %v435_v53 = vadd.f32 %v548_v48, %v427_v51 }
 0x165   : > { %438 = vst [vmem:[%s230_s28 + $0x8] sm:$0xff] %v436_v52 }
 0x166   : > { %437 = vst [vmem:[%s230_s28] sm:$0xff] %v435_v53 }
 0x167   : > { %862 = shalt.err (!%p859_p7)
}
 0x168   : > { %s863_s5 = scalar_lea.hbm %s1134_s26, 256  ;;  %s867_s23 = scalar_lea.hbm %s1184_s4, 512 }
 0x169   : > { %p864_p9 = scmp.ne.s32.totalorder %s1134_s26, %s863_s5  ;;  %p868_p5 = scmp.lt.u32.totalorder %s1134_s26, %s1184_s4 }
 0x16a   : > { %p869_p11 = scmp.lt.u32.totalorder %s867_s23, %s863_s5  ;;  %p871_p4 = scmp.lt.u32.totalorder %s863_s5, %s1134_s26 }
 0x16b   : > { %p865_p1 = pnand %p864_p9, %p1047_p12 }
 0x16c   : > { %p870_p2 = por %p869_p11, %p868_p5 }
 0x16d   : > { %p866_p0 = pneg %p865_p1 }
 0x16e   : > { %p872_p6 = por %p871_p4, %p870_p2 }
 0x170   : > { %p873_p8 = pnand %p872_p6, %p866_p0 }
 0x172   : > { %876 = shalt.err (!%p873_p8)
}
 0x173   : > { %s926_s9 = smov 128   ;;  %s927_s28 = smov 8  }
 0x174   : > { %732 = dma.vmem_to_hbm [thread:$0]  (%p1047_p12), %s1136_s10, 256, %s1134_s26, %s440_s19, %s926_s9, %s926_s9, %s927_s28  }
 0x175 PF: > { %s468_s6 = sand.u32 1, %s907_s15   ;;  %p1199_p10 = scmp.ne.s32.totalorder %s1189_s22, 0 }
 0x176   : > { %p1200_p13 = scmp.ge.s32.totalorder %s919_s18, 2  ;;  %s469_s7 = scalar_lea.sflag [#allocation4], %s468_s6 }
 0x178   : > { %p743_p3 = pnand %p1200_p13, %p1199_p10 }
 0x17a   : > { %902 = dma.done.wait (!%p743_p3), %s469_s7, 256  }
 0x17b   : > { %904 = vsyncadd (!%p743_p3), %s469_s7, 4294967040  ;;  %p18_p7 = scmp.ge.s32.totalorder %s1009_s27, 4   ;;  %s1201_s15 = smov %s911_s16 }
 0x17c   : > { %s1202_s16 = smov %s915_s17  ;;  %s1203_s17 = smov %s1043_s24 }
 0x17d   : > { %s1204_s18 = smov %s1009_s27  ;;  %20 = sbr.rel (!%p18_p7) target bundleno = 6 (0x6), region = 85 }
 0x184   :  { %474 = vsyncpa [#allocation3], 1 }
 0x185   :  { %476 = vsyncpa [#allocation3 + $0x1], 1 }
 0x186   :  { %477 = vsyncpa [#allocation6], 1 }
 0x187   :  { %478 = vsyncpa [#allocation4], 1 }
 0x188   :  { %480 = vsyncpa [#allocation4 + $0x1], 1 }

</bundles_post_ra>
